<compile_context>
chip_gen: v5e
topology: v5e:2x2
jax: 0.10.0
libtpu: 0.0.40
codegen_flags: <defaults>
</compile_context>

<pallas_src>
import math

import jax
import jax.numpy as jnp
from jax.experimental import pallas as pl
from jax.experimental.pallas import tpu as pltpu


# -----------------------------------------------------------------------------
# Generic tiled matmul (+ optional bias) kernel
# -----------------------------------------------------------------------------
def _matmul_kernel(x_ref, w_ref, o_ref, acc_ref):
    @pl.when(pl.program_id(2) == 0)
    def _init():
        acc_ref[...] = jnp.zeros_like(acc_ref)

    acc_ref[...] += jnp.dot(x_ref[...], w_ref[...],
                            preferred_element_type=jnp.float32)

    @pl.when(pl.program_id(2) == pl.num_programs(2) - 1)
    def _done():
        o_ref[...] = acc_ref[...].astype(o_ref.dtype)


def _matmul_bias_kernel(x_ref, w_ref, b_ref, o_ref, acc_ref):
    @pl.when(pl.program_id(2) == 0)
    def _init():
        acc_ref[...] = jnp.zeros_like(acc_ref)

    acc_ref[...] += jnp.dot(x_ref[...], w_ref[...],
                            preferred_element_type=jnp.float32)

    @pl.when(pl.program_id(2) == pl.num_programs(2) - 1)
    def _done():
        o_ref[...] = (acc_ref[...] + b_ref[...]).astype(o_ref.dtype)


def pallas_linear(x, w, b=None, *, bm=512, bn=512, bk=512,
                  mxu_dtype=None, out_dtype=jnp.float32):
    """x: (M, K), w: (K, N), b: (N,) or None -> (M, N).

    3-axis tiled matmul with an f32 VMEM accumulator.  `mxu_dtype=jnp.bfloat16`
    casts the MXU inputs (recommended on v6e/v7x); accumulation stays f32.
    Tile sizes should be sized against the per-generation VMEM budget
    (16 MiB scoped default on v5e, 32 MiB on v6e/v7x).
    """
    M, K = x.shape
    Kw, N = w.shape
    assert K == Kw
    if mxu_dtype is not None:
        x = x.astype(mxu_dtype)
        w = w.astype(mxu_dtype)

    bm = min(bm, M)
    bn = min(bn, N)
    bk = min(bk, K)
    if K % bk:
        bk = math.gcd(bk, K)  # K blocks must tile exactly (accumulator correctness)

    grid = (pl.cdiv(M, bm), pl.cdiv(N, bn), K // bk)
    x_spec = pl.BlockSpec((bm, bk), lambda i, j, kk: (i, kk))
    w_spec = pl.BlockSpec((bk, bn), lambda i, j, kk: (kk, j))
    o_spec = pl.BlockSpec((bm, bn), lambda i, j, kk: (i, j))
    scratch = [pltpu.VMEM((bm, bn), jnp.float32)]
    params = pltpu.CompilerParams(
        dimension_semantics=("parallel", "parallel", "arbitrary"))

    if b is None:
        return pl.pallas_call(
            _matmul_kernel,
            out_shape=jax.ShapeDtypeStruct((M, N), out_dtype),
            grid=grid,
            in_specs=[x_spec, w_spec],
            out_specs=o_spec,
            scratch_shapes=scratch,
            compiler_params=params,
        )(x, w)

    b2 = b.reshape(1, N).astype(jnp.float32)
    b_spec = pl.BlockSpec((1, bn), lambda i, j, kk: (0, j))
    return pl.pallas_call(
        _matmul_bias_kernel,
        out_shape=jax.ShapeDtypeStruct((M, N), out_dtype),
        grid=grid,
        in_specs=[x_spec, w_spec, b_spec],
        out_specs=o_spec,
        scratch_shapes=scratch,
        compiler_params=params,
    )(x, w, b2)


# -----------------------------------------------------------------------------
# Cross-replica attention kernel (replica RoPE + softmax over the replica axis)
# -----------------------------------------------------------------------------
def _cross_attn_kernel(qkv_ref, cq_ref, sq_ref, ck_ref, sk_ref,
                       seg_ref, segt_ref, exp_ref, o_ref):
    # Shapes (dim-major lane order, lane = d_h_index * n_heads + head):
    #   qkv_ref : (P, ts, Dq + 2*Dk)      fused q|k|v activations
    #   cq/sq   : (P, Dq)   cos / signed-sin for q (1/sqrt(d_h) folded in)
    #   ck/sk   : (P, Dk)   cos / signed-sin for k
    #   seg     : (Dq, H)   0/1 per-head segment-sum matrix
    #   segt    : (H, Dq)   its transpose (per-head broadcast matrix)
    #   exp     : (Dk, Dq)  0/1 GQA expansion matrix (kv head = q head % KVH)
    #   o_ref   : (P, ts, Dq)
    seg = seg_ref[...]
    segt = segt_ref[...]
    expm = exp_ref[...]
    Dq = seg.shape[0]
    Dk = expm.shape[0]

    qkv = qkv_ref[...]
    P = qkv.shape[0]
    q = qkv[:, :, :Dq]
    k = qkv[:, :, Dq:Dq + Dk]
    v = qkv[:, :, Dq + Dk:]

    cq = cq_ref[...][:, None, :]
    sq = sq_ref[...][:, None, :]
    ck = ck_ref[...][:, None, :]
    sk = sk_ref[...][:, None, :]

    def half_swap(x):
        # rotate_half in dim-major lane order == swap the two halves of the whole
        # lane axis (the minus sign lives in the sin table).  pltpu.roll(x, D//2,
        # axis=-1) is the XLU-slot equivalent of this shuffle.
        h = x.shape[-1] // 2
        return jnp.concatenate([x[..., h:], x[..., :h]], axis=-1)

    # Replica RoPE (q already carries the 1/sqrt(d_h) softmax scale via cq/sq).
    q = q * cq + half_swap(q) * sq
    k = k * ck + half_swap(k) * sk

    # GQA expansion on the (otherwise idle) MXU — no duplicated K/V HBM traffic.
    kx = [jnp.dot(k[j], expm, preferred_element_type=jnp.float32) for j in range(P)]
    vx = [jnp.dot(v[j], expm, preferred_element_type=jnp.float32) for j in range(P)]

    # scores[i][j] : (ts, H) — elementwise product + block-diagonal segment sum on
    # the MXU keeps everything lane-dense (no XLU lane reductions, no reshapes).
    scores = [[jnp.dot(q[i] * kx[j], seg, preferred_element_type=jnp.float32)
               for j in range(P)] for i in range(P)]

    for i in range(P):
        m = scores[i][0]
        for j in range(1, P):
            m = jnp.maximum(m, scores[i][j])
        e = [jnp.exp(scores[i][j] - m) for j in range(P)]
        den = e[0]
        for j in range(1, P):
            den = den + e[j]
        inv = pl.reciprocal(den, approx=True)  # EUP slot, off the VPU critical path

        acc = None
        for j in range(P):
            w = jnp.dot(e[j] * inv, segt, preferred_element_type=jnp.float32)
            contrib = w * vx[j]
            acc = contrib if acc is None else acc + contrib
        o_ref[i] = acc


def pallas_cross_attn(qkv4, cos_q, sin_q, cos_k, sin_k, seg, segt, expmat,
                      *, block_s=256):
    """qkv4: (p, b, s, Dq+2Dk) fused activations; returns (p, b, s, Dq)."""
    p, b, s, ntot = qkv4.shape
    Dq, H = seg.shape
    Dk = expmat.shape[0]
    ts = min(block_s, s)
    grid = (b, pl.cdiv(s, ts))

    return pl.pallas_call(
        _cross_attn_kernel,
        out_shape=jax.ShapeDtypeStruct((p, b, s, Dq), jnp.float32),
        grid=grid,
        in_specs=[
            pl.BlockSpec((p, None, ts, ntot), lambda bi, si: (0, bi, si, 0)),
            pl.BlockSpec((None, p, Dq), lambda bi, si: (bi, 0, 0)),
            pl.BlockSpec((None, p, Dq), lambda bi, si: (bi, 0, 0)),
            pl.BlockSpec((None, p, Dk), lambda bi, si: (bi, 0, 0)),
            pl.BlockSpec((None, p, Dk), lambda bi, si: (bi, 0, 0)),
            pl.BlockSpec((Dq, H), lambda bi, si: (0, 0)),
            pl.BlockSpec((H, Dq), lambda bi, si: (0, 0)),
            pl.BlockSpec((Dk, Dq), lambda bi, si: (0, 0)),
        ],
        out_specs=pl.BlockSpec((p, None, ts, Dq), lambda bi, si: (0, bi, si, 0)),
        compiler_params=pltpu.CompilerParams(
            dimension_semantics=("parallel", "parallel")),
    )(qkv4, cos_q, sin_q, cos_k, sin_k, seg, segt, expmat)


# -----------------------------------------------------------------------------
# Full forward (mirrors CrossReplicaAttention.forward in eval mode)
# -----------------------------------------------------------------------------
def cross_replica_attention_forward(
    hidden, Wq, bq, Wk, bk, Wv, bv, Wo, cos, sin, *,
    parscale_n, num_heads, num_kv_heads,
    bm=512, block_s=256, mxu_dtype=None,
):
    pb, s, d = hidden.shape
    p = parscale_n
    b = pb // p
    H = num_heads
    KVH = num_kv_heads
    dh = d // H
    Dq = H * dh
    Dk = KVH * dh
    scale = 1.0 / math.sqrt(dh)

    # ---- one-time weight-level preprocessing (in a real model: done at load time)
    # Permute feature columns to dim-major lane order and fuse Q|K|V.
    lq = jnp.arange(Dq)
    lk = jnp.arange(Dk)
    perm_q = (lq % H) * dh + lq // H
    perm_k = (lk % KVH) * dh + lk // KVH
    W_qkv = jnp.concatenate(
        [Wq[:, perm_q], Wk[:, perm_k], Wv[:, perm_k]], axis=1)       # (d, Dq+2Dk)
    b_qkv = jnp.concatenate([bq[perm_q], bk[perm_k], bv[perm_k]], axis=0)
    Wo_dm = Wo[perm_q, :]                                            # rows permuted

    # Tiny per-(batch, replica) RoPE tables in dim-major order; rotate_half's sign
    # and the 1/sqrt(d_h) attention scale are folded in here (zero in-kernel cost).
    sign = jnp.concatenate([-jnp.ones((dh // 2,), jnp.float32),
                            jnp.ones((dh // 2,), jnp.float32)])
    cos_q = jnp.repeat(cos, H, axis=-1) * scale                      # (b, p, Dq)
    sin_q = jnp.repeat(sin * sign, H, axis=-1) * scale
    cos_k = jnp.repeat(cos, KVH, axis=-1)                            # (b, p, Dk)
    sin_k = jnp.repeat(sin * sign, KVH, axis=-1)

    # Per-head segment-sum / broadcast matrices and the GQA expansion matrix.
    seg = (lq[:, None] % H == jnp.arange(H)[None, :]).astype(jnp.float32)   # (Dq, H)
    segt = seg.T                                                            # (H, Dq)
    expmat = ((lk[:, None] // KVH == lq[None, :] // H) &
              (lk[:, None] % KVH == (lq[None, :] % H) % KVH)).astype(jnp.float32)

    # ---- fused QKV projection: activations read from HBM once, wide lane-dense out
    x2 = hidden.reshape(pb * s, d)
    qkv = pallas_linear(x2, W_qkv, b_qkv, bm=bm, mxu_dtype=mxu_dtype)
    qkv4 = qkv.reshape(p, b, s, Dq + 2 * Dk)   # free reshape: '(p b) s' split

    # ---- cross-replica attention (RoPE + softmax over the replica axis)
    attn = pallas_cross_attn(qkv4, cos_q, sin_q, cos_k, sin_k,
                             seg, segt, expmat, block_s=block_s)

    # ---- output projection (no bias); reshapes are free leading-dim merges
    o2 = attn.reshape(pb * s, Dq)
    out = pallas_linear(o2, Wo_dm, None, bm=bm, mxu_dtype=mxu_dtype)
    return out.reshape(pb, s, d)


# -----------------------------------------------------------------------------
# Pure-JAX reference (mirrors the PyTorch forward)
# -----------------------------------------------------------------------------
def reference_forward(
    hidden, Wq, bq, Wk, bk, Wv, bv, Wo, cos, sin, *,
    parscale_n, num_heads, num_kv_heads,
):
    pb, s, d = hidden.shape
    p = parscale_n
    b = pb // p
    head_dim = d // num_heads
    groups = num_heads // num_kv_heads

    q = hidden @ Wq + bq
    k = hidden @ Wk + bk
    v = hidden @ Wv + bv

    def split(x, h):
        return x.reshape(p, b, s, h, head_dim).transpose(1, 2, 3, 0, 4)

    q = split(q, num_heads)
    k = split(k, num_kv_heads)
    v = split(v, num_kv_heads)

    cos_e = cos[:, None, None, :, :]
    sin_e = sin[:, None, None, :, :]

    def rot_half(x):
        half = x.shape[-1] // 2
        return jnp.concatenate([-x[..., half:], x[..., :half]], axis=-1)

    q = q * cos_e + rot_half(q) * sin_e
    k = k * cos_e + rot_half(k) * sin_e

    if groups > 1:
        k = jnp.broadcast_to(
            k[:, :, None], (b, s, groups, num_kv_heads, p, head_dim)
        ).reshape(b, s, num_heads, p, head_dim)
        v = jnp.broadcast_to(
            v[:, :, None], (b, s, groups, num_kv_heads, p, head_dim)
        ).reshape(b, s, num_heads, p, head_dim)

    scale = 1.0 / math.sqrt(head_dim)
    scores = jnp.einsum("bshpd,bshqd->bshpq", q, k) * scale
    attn = jax.nn.softmax(scores, axis=-1)
    out = jnp.einsum("bshpq,bshqd->bshpd", attn, v)
    out = out.transpose(3, 0, 1, 2, 4).reshape(pb, s, num_heads * head_dim)
    return out @ Wo


# -----------------------------------------------------------------------------
# Main
# -----------------------------------------------------------------------------
if __name__ == "__main__":
    parscale_n = 4        # p
    batch = 2             # b
    seq = 8               # s
    hidden_size = 64      # d
    num_heads = 4
    num_kv_heads = 2      # GQA, groups = 2
    head_dim = hidden_size // num_heads  # 16
    kv_dim = num_kv_heads * head_dim     # 32

    key = jax.random.PRNGKey(0)
    kx, kq, kbq, kk, kbk, kv, kbv, ko = jax.random.split(key, 8)

    hidden = jax.random.normal(
        kx, (parscale_n * batch, seq, hidden_size), dtype=jnp.float32
    )

    Wq = jax.random.normal(kq, (hidden_size, hidden_size), jnp.float32) * 0.02
    bq = jax.random.normal(kbq, (hidden_size,), jnp.float32) * 0.02
    Wk = jax.random.normal(kk, (hidden_size, kv_dim), jnp.float32) * 0.02
    bk = jax.random.normal(kbk, (kv_dim,), jnp.float32) * 0.02
    Wv = jax.random.normal(kv, (hidden_size, kv_dim), jnp.float32) * 0.02
    bv = jax.random.normal(kbv, (kv_dim,), jnp.float32) * 0.02
    Wo = jax.random.normal(ko, (hidden_size, hidden_size), jnp.float32) * 0.02

    # Replica RoPE embeddings: cos/sin of shape (b, p, head_dim)
    inv_freq = 1.0 / (
        10000.0 ** (jnp.arange(0, head_dim, 2, dtype=jnp.float32) / head_dim)
    )
    pos = jnp.arange(parscale_n, dtype=jnp.float32)
    freqs = pos[:, None] * inv_freq[None, :]
    emb = jnp.concatenate([freqs, freqs], axis=-1)
    cos = jnp.broadcast_to(jnp.cos(emb)[None], (batch, parscale_n, head_dim))
    sin = jnp.broadcast_to(jnp.sin(emb)[None], (batch, parscale_n, head_dim))

    out = cross_replica_attention_forward(
        hidden, Wq, bq, Wk, bk, Wv, bv, Wo, cos, sin,
        parscale_n=parscale_n, num_heads=num_heads, num_kv_heads=num_kv_heads,
        # mxu_dtype=jnp.bfloat16 is recommended on v6e/v7x; kept f32 here so the
        # strict numerical check against the f32 reference holds.
        mxu_dtype=None,
    )
    out = jax.block_until_ready(out)

    ref = reference_forward(
        hidden, Wq, bq, Wk, bk, Wv, bv, Wo, cos, sin,
        parscale_n=parscale_n, num_heads=num_heads, num_kv_heads=num_kv_heads,
    )
    ref = jax.block_until_ready(ref)

    assert out.shape == (parscale_n * batch, seq, hidden_size)
    assert jnp.allclose(out, ref, rtol=1e-3, atol=1e-3), (
        float(jnp.max(jnp.abs(out - ref)))
    )
    print("KERNEL_OK")
</pallas_src>

<mosaic_0001>
module attributes {stable_mosaic.version = 11 : i64} {
  func.func @_matmul_bias_kernel(%arg0: i32, %arg1: i32, %arg2: i32, %arg3: memref<64x64xf32, #tpu.memory_space<vmem>>, %arg4: memref<64x128xf32, #tpu.memory_space<vmem>>, %arg5: memref<1x128xf32, #tpu.memory_space<vmem>>, %arg6: memref<64x128xf32, #tpu.memory_space<vmem>>, %arg7: memref<64x128xf32, #tpu.memory_space<vmem>>) attributes {dimension_semantics = [#tpu.dimension_semantics<parallel>, #tpu.dimension_semantics<parallel>, #tpu.dimension_semantics<arbitrary>], iteration_bounds = array<i64: 1, 1, 1>, scalar_prefetch = 0 : i64, scratch_operands = 1 : i64, tpu.core_type = #tpu.core_type<tc>, window_params = [{transform_indices = @transform_0, window_bounds = array<i64: 64, 64>}, {transform_indices = @transform_1, window_bounds = array<i64: 64, 128>}, {transform_indices = @transform_2, window_bounds = array<i64: 1, 128>}, {transform_indices = @transform_3, window_bounds = array<i64: 64, 128>}]} {
    %c0_i32 = arith.constant 0 : i32
    %0 = arith.cmpi eq, %arg2, %c0_i32 : i32
    %1 = arith.extui %0 : i1 to i32
    %c0_i32_0 = arith.constant 0 : i32
    %2 = arith.cmpi ne, %1, %c0_i32_0 : i32
    scf.if %2 {
      %cst_10 = arith.constant 0.000000e+00 : f32
      %12 = vector.broadcast %cst_10 : f32 to vector<64x128xf32>
      %c0_11 = arith.constant 0 : index
      %c0_12 = arith.constant 0 : index
      %13 = vector.load %arg7[%c0_11, %c0_12] : memref<64x128xf32, #tpu.memory_space<vmem>>, vector<64x128xf32>
      tpu.vector_store %arg7[%c0_11, %c0_12], %12 {strides = array<i32>} : memref<64x128xf32, #tpu.memory_space<vmem>>, vector<64x128xf32>,
    } else {
    }
    %c0 = arith.constant 0 : index
    %c0_1 = arith.constant 0 : index
    %3 = vector.load %arg7[%c0, %c0_1] : memref<64x128xf32, #tpu.memory_space<vmem>>, vector<64x128xf32>
    %c0_2 = arith.constant 0 : index
    %c0_3 = arith.constant 0 : index
    %4 = vector.load %arg3[%c0_2, %c0_3] : memref<64x64xf32, #tpu.memory_space<vmem>>, vector<64x64xf32>
    %c0_4 = arith.constant 0 : index
    %c0_5 = arith.constant 0 : index
    %5 = vector.load %arg4[%c0_4, %c0_5] : memref<64x128xf32, #tpu.memory_space<vmem>>, vector<64x128xf32>
    %cst = arith.constant dense<0.000000e+00> : vector<64x128xf32>
    %6 = tpu.matmul %4, %5, %cst {dimension_numbers = #tpu.dot_dimension_numbers<[1], [0], [0], [1], [0, 0, 1, 1], [], []>} : vector<64x64xf32>, vector<64x128xf32>, vector<64x128xf32> -> vector<64x128xf32>
    %7 = arith.addf %3, %6 : vector<64x128xf32>
    %c0_6 = arith.constant 0 : index
    %c0_7 = arith.constant 0 : index
    %8 = vector.load %arg7[%c0_6, %c0_7] : memref<64x128xf32, #tpu.memory_space<vmem>>, vector<64x128xf32>
    tpu.vector_store %arg7[%c0_6, %c0_7], %7 {strides = array<i32>} : memref<64x128xf32, #tpu.memory_space<vmem>>, vector<64x128xf32>,
    %c0_i32_8 = arith.constant 0 : i32
    %9 = arith.cmpi eq, %arg2, %c0_i32_8 : i32
    %10 = arith.extui %9 : i1 to i32
    %c0_i32_9 = arith.constant 0 : i32
    %11 = arith.cmpi ne, %10, %c0_i32_9 : i32
    scf.if %11 {
      %c0_10 = arith.constant 0 : index
      %c0_11 = arith.constant 0 : index
      %12 = vector.load %arg7[%c0_10, %c0_11] : memref<64x128xf32, #tpu.memory_space<vmem>>, vector<64x128xf32>
      %c0_12 = arith.constant 0 : index
      %c0_13 = arith.constant 0 : index
      %13 = vector.load %arg5[%c0_12, %c0_13] : memref<1x128xf32, #tpu.memory_space<vmem>>, vector<1x128xf32>
      %14 = vector.broadcast %13 : vector<1x128xf32> to vector<64x128xf32>
      %15 = arith.addf %12, %14 : vector<64x128xf32>
      %c0_14 = arith.constant 0 : index
      %c0_15 = arith.constant 0 : index
      %16 = vector.load %arg6[%c0_14, %c0_15] : memref<64x128xf32, #tpu.memory_space<vmem>>, vector<64x128xf32>
      tpu.vector_store %arg6[%c0_14, %c0_15], %15 {strides = array<i32>} : memref<64x128xf32, #tpu.memory_space<vmem>>, vector<64x128xf32>,
    } else {
    }
    return
  }
  func.func @transform_0(%arg0: i32, %arg1: i32, %arg2: i32) -> (i32, i32) {
    %c0_i32 = arith.constant 0 : i32
    return %arg0, %arg2 : i32, i32
  }
  func.func @transform_1(%arg0: i32, %arg1: i32, %arg2: i32) -> (i32, i32) {
    %c0_i32 = arith.constant 0 : i32
    return %arg2, %arg1 : i32, i32
  }
  func.func @transform_2(%arg0: i32, %arg1: i32, %arg2: i32) -> (i32, i32) {
    %c0_i32 = arith.constant 0 : i32
    %c0_i32_0 = arith.constant 0 : i32
    return %c0_i32, %arg1 : i32, i32
  }
  func.func @transform_3(%arg0: i32, %arg1: i32, %arg2: i32) -> (i32, i32) {
    %c0_i32 = arith.constant 0 : i32
    return %arg0, %arg1 : i32, i32
  }
}

</mosaic_0001>

<bundles_post_ra>
// kernel: tpu_custom_call.1
= control target key start
LH: loop header
LB: loop body
LE: loop exit
PB: predicated region body
PF: predicated region fallthrough
CT: control target
= control target key end

     0   :  { %8 = vsyncpa [#allocation4], 0  ;;  %s386_s0 = inlined_call_operand.hbm [shape: f32[64,64], index: 0, kind: input, shape index: {}]   ;;  %s387_s1 = inlined_call_operand.hbm [shape: f32[64,128], index: 1, kind: input, shape index: {}]   ;;  %s388_s2 = inlined_call_operand.vmem [shape: f32[1,128], index: 2, kind: input, shape index: {}]   ;;  %s389_s3 = inlined_call_operand.hbm [shape: f32[64,128], index: 3, kind: output, shape index: {}]  }
   0x1   :  { %9 = vsyncpa [#allocation7], 0 }
   0x2   :  { %10 = vsyncpa [#allocation5], 0  ;;  %s15_s14 = sshll.u32 %s386_s0, 4  ;;  %s332_s15 = smov [#allocation3]   ;;  %s16_s14 = int_to_ptr.hbm [resolvable:$true] %s15_s14 }
   0x3   :  { %s17_s16 = sshll.u32 %s332_s15, 4  ;;  %s28_s19 = sshll.u32 %s387_s1, 4  ;;  %s18_s16 = int_to_ptr.vmem [resolvable:$true] %s17_s16  ;;  %s29_s19 = int_to_ptr.hbm [resolvable:$true] %s28_s19 }
   0x4   :  { %s333_s20 = smov 128   ;;  %s334_s21 = smov 8  }
   0x5   :  { %23 = dma.hbm_to_vmem [thread:$0]  %s16_s14, 1024, %s18_s16, [#allocation4], %s333_s20, %s333_s20, %s334_s21  }
   0x6   :  { %s335_s22 = smov [#allocation6]  }
   0x7   :  { %s30_s23 = sshll.u32 %s335_s22, 4  ;;  %s31_s23 = int_to_ptr.vmem [resolvable:$true] %s30_s23 }
   0x8   :  { %36 = dma.hbm_to_vmem [thread:$0]  %s29_s19, 1024, %s31_s23, [#allocation7], %s333_s20, %s333_s20, %s334_s21  }
   0x9   :  { %326 = dma.done.wait [#allocation4], 1024  }
   0xa   :  { %327 = vsyncadd [#allocation4], 4294966272 }
   0xb   :  { %328 = dma.done.wait [#allocation7], 1024  }
   0xc   :  { %329 = vsyncadd [#allocation7], 4294966272  ;;  %v82_v0 = vld [vmem:[#allocation6 + $0x38] sm:$0xff]  ;;  %v81_v1 = vld [vmem:[#allocation6 + $0x30] sm:$0xff]  ;;  %vm83_vm0 = vcmask 523264   ;;  %s336_s24 = smov [#allocation8]  }
   0xd   :  { %225 = vmatpush.msra.mxu2 %v82_v0  ;;  %226 = vmatpush.msra.mxu3 %v82_v0  ;;  %v80_v2 = vld [vmem:[#allocation6 + $0x28] sm:$0xff]  ;;  %v79_v3 = vld [vmem:[#allocation6 + $0x20] sm:$0xff]  ;;  %v78_v4 = vld [vmem:[#allocation6 + $0x18] sm:$0xff]  ;;  %s200_s25 = sshll.u32 %s336_s24, 4  ;;  %s202_s27 = sshll.u32 %s389_s3, 4  ;;  %s201_s25 = int_to_ptr.vmem [resolvable:$true] %s200_s25  ;;  %s203_s27 = int_to_ptr.hbm [resolvable:$true] %s202_s27 }
   0xe   :  { %116 = vmatpush.msra.mxu0 %v82_v0  ;;  %224 = vmatpush.msra.mxu1 %v82_v0  ;;  %v77_v5 = vld [vmem:[#allocation6 + $0x10] sm:$0xff]  ;;  %v76_v6 = vld [vmem:[#allocation6 + $0x8] sm:$0xff]  ;;  %v75_v7 = vld [vmem:[#allocation6] sm:$0xff] }
   0xf   :  { %228 = vmatpush.msra.mxu2 %v81_v1  ;;  %229 = vmatpush.msra.mxu3 %v81_v1  ;;  %v71_v8 = vld [vmem:[#allocation3 + $0x20] sm:$0xff]  ;;  %v73_v9 = vld [vmem:[#allocation3 + $0x30] sm:$0xff]  ;;  %v72_v12 = vld [vmem:[#allocation3 + $0x28] sm:$0xff] }
  0x10   :  { %117 = vmatpush.msra.mxu0 %v81_v1  ;;  %227 = vmatpush.msra.mxu1 %v81_v1  ;;  %v67_v10 = vld [vmem:[#allocation3] sm:$0xff]  ;;  %v69_v11 = vld [vmem:[#allocation3 + $0x10] sm:$0xff]  ;;  %v74_v13 = vld [vmem:[#allocation3 + $0x38] sm:$0xff] }
  0x11   :  { %231 = vmatpush.msra.mxu2 %v80_v2  ;;  %232 = vmatpush.msra.mxu3 %v80_v2  ;;  %v68_v14 = vld [vmem:[#allocation3 + $0x8] sm:$0xff]  ;;  %v70_v15 = vld [vmem:[#allocation3 + $0x18] sm:$0xff]  ;;  %v253_v16 = vld [vmem:[%s388_s2] ss:$0 sm:$0xff] }
  0x12   :  { %118 = vmatpush.msra.mxu0 %v80_v2  ;;  %230 = vmatpush.msra.mxu1 %v80_v2 }
  0x13   :  { %234 = vmatpush.msra.mxu2 %v79_v3  ;;  %235 = vmatpush.msra.mxu3 %v79_v3 }
  0x14   :  { %119 = vmatpush.msra.mxu0 %v79_v3  ;;  %233 = vmatpush.msra.mxu1 %v79_v3 }
  0x15   :  { %237 = vmatpush.msra.mxu2 %v78_v4  ;;  %238 = vmatpush.msra.mxu3 %v78_v4 }
  0x16   :  { %120 = vmatpush.msra.mxu0 %v78_v4  ;;  %236 = vmatpush.msra.mxu1 %v78_v4 }
  0x17   :  { %240 = vmatpush.msra.mxu2 %v77_v5  ;;  %241 = vmatpush.msra.mxu3 %v77_v5 }
  0x18   :  { %121 = vmatpush.msra.mxu0 %v77_v5  ;;  %239 = vmatpush.msra.mxu1 %v77_v5 }
  0x19   :  { %243 = vmatpush.msra.mxu2 %v76_v6  ;;  %244 = vmatpush.msra.mxu3 %v76_v6 }
  0x1a   :  { %122 = vmatpush.msra.mxu0 %v76_v6  ;;  %242 = vmatpush.msra.mxu1 %v76_v6 }
  0x1b   :  { %246 = vmatpush.msra.mxu2 %v75_v7  ;;  %247 = vmatpush.msra.mxu3 %v75_v7 }
  0x1c   :  { %220 = vmatmul.msk.f32.vlgmr.msra.gmra.mxu2 %vm83_vm0, %v71_v8  ;;  %222 = vmatmul.msk.f32.vlgmr.msra.gmra.mxu3 %vm83_vm0, %v73_v9 }
  0x1d   :  { %123 = vmatpush.msra.mxu0 %v75_v7  ;;  %245 = vmatpush.msra.mxu1 %v75_v7 }
  0x1e   :  { %216 = vmatmul.msk.f32.vlgmr.msra.gmra.mxu0 %vm83_vm0, %v67_v10  ;;  %218 = vmatmul.msk.f32.vlgmr.msra.gmra.mxu1 %vm83_vm0, %v69_v11 }
  0x24   :  { %221 = vmatmul.msk.f32.gmra.mxu2 %vm83_vm0, %v72_v12  ;;  %223 = vmatmul.msk.f32.gmra.mxu3 %vm83_vm0, %v74_v13 }
  0x26   :  { %217 = vmatmul.msk.f32.gmra.mxu0 %vm83_vm0, %v68_v14  ;;  %219 = vmatmul.msk.f32.gmra.mxu1 %vm83_vm0, %v70_v15 }
  0x9b   :  { %v125_v17 = vpop.f32.mrf.mxu0  ;;  %v131_v18 = vpop.f32.mrf.mxu1 }
  0x9c   :  { %v180_v19 = vadd.f32 %v253_v16, %v125_v17  ;;  %v182_v20 = vadd.f32 %v253_v16, %v131_v18 }
  0x9e   :  { %188 = vst [vmem:[#allocation8] sm:$0xff] %v180_v19 }
  0x9f   :  { %190 = vst [vmem:[#allocation8 + $0x10] sm:$0xff] %v182_v20  ;;  %v137_v21 = vpop.f32.mrf.mxu2  ;;  %v143_v22 = vpop.f32.mrf.mxu3 }
  0xa0   :  { %v184_v23 = vadd.f32 %v253_v16, %v137_v21  ;;  %v186_v24 = vadd.f32 %v253_v16, %v143_v22 }
  0xa2   :  { %192 = vst [vmem:[#allocation8 + $0x20] sm:$0xff] %v184_v23 }
  0xa3   :  { %194 = vst [vmem:[#allocation8 + $0x30] sm:$0xff] %v186_v24  ;;  %v128_v25 = vpop.f32.mrf.mxu0  ;;  %v134_v26 = vpop.f32.mrf.mxu1 }
  0xa4   :  { %v181_v27 = vadd.f32 %v253_v16, %v128_v25  ;;  %v183_v28 = vadd.f32 %v253_v16, %v134_v26 }
  0xa6   :  { %189 = vst [vmem:[#allocation8 + $0x8] sm:$0xff] %v181_v27 }
  0xa7   :  { %191 = vst [vmem:[#allocation8 + $0x18] sm:$0xff] %v183_v28  ;;  %v140_v29 = vpop.f32.mrf.mxu2  ;;  %v146_v30 = vpop.f32.mrf.mxu3 }
  0xa8   :  { %v185_v31 = vadd.f32 %v253_v16, %v140_v29  ;;  %v187_v32 = vadd.f32 %v253_v16, %v146_v30 }
  0xaa   :  { %193 = vst [vmem:[#allocation8 + $0x28] sm:$0xff] %v185_v31 }
  0xab   :  { %195 = vst [vmem:[#allocation8 + $0x38] sm:$0xff] %v187_v32 }
  0xac   :  { %208 = dma.vmem_to_hbm [thread:$0]  %s201_s25, 1024, %s203_s27, [#allocation5], %s333_s20, %s333_s20, %s334_s21  }
  0xad   :  { %330 = dma.done.wait [#allocation5], 1024  }
  0xae   :  { %331 = vsyncadd [#allocation5], 4294966272 }
  0xaf   :  { %213 = vsyncpa [#allocation4], 1 }
  0xb0   :  { %214 = vsyncpa [#allocation7], 1 }
  0xb1   :  { %215 = vsyncpa [#allocation5], 1 }

</bundles_post_ra>
